<compile_context>
chip_gen: v6e
topology: v6e:2x2x1
jax: 0.10.0
libtpu: 0.0.40
codegen_flags: <defaults>
</compile_context>

<pallas_src>
import math

import jax
import jax.numpy as jnp
from jax.experimental import pallas as pl
from jax.experimental.pallas import tpu as pltpu


def _largest_divisor(n, cap):
    """Largest divisor of n that is <= cap (so every grid tile divides evenly)."""
    d = min(n, cap)
    while n % d:
        d -= 1
    return d


# ----------------------------------------------------------------------------
# Kernel 1: tiled linear (y = x @ w.T + b), PyTorch weight layout w: (N, K).
# grid = (M/tm, N/tn, K/tk), f32 accumulator scratch, init/finalize on K axis.
# ----------------------------------------------------------------------------
def linear_kernel(x_ref, w_ref, b_ref, o_ref, acc_ref):
    @pl.when(pl.program_id(2) == 0)
    def _init():
        acc_ref[...] = jnp.zeros_like(acc_ref)

    # x: (tm, tk), w: (tn, tk)  -> contract K dims of both (no transpose in HBM).
    acc_ref[...] += jax.lax.dot_general(
        x_ref[...], w_ref[...],
        dimension_numbers=(((1,), (1,)), ((), ())),
        preferred_element_type=jnp.float32)

    @pl.when(pl.program_id(2) == pl.num_programs(2) - 1)
    def _finalize():
        o_ref[...] = (acc_ref[...] + b_ref[...].astype(jnp.float32)).astype(o_ref.dtype)


def linear_pallas(x, w, b, *, tm_cap=256, tn_cap=256, tk_cap=512):
    """y = x @ w.T + b.   x: (M, K), w: (N, K) [torch nn.Linear layout], b: (N,)."""
    M, K = x.shape
    N, Kw = w.shape
    assert K == Kw
    tm = _largest_divisor(M, tm_cap)
    tn = _largest_divisor(N, tn_cap)
    tk = _largest_divisor(K, tk_cap)
    b2 = b.reshape(1, N)
    itemsize = jnp.dtype(x.dtype).itemsize
    cost = pl.CostEstimate(
        flops=2 * M * N * K,
        transcendentals=0,
        bytes_accessed=(M * K + N * K + M * N + N) * itemsize)
    return pl.pallas_call(
        linear_kernel,
        out_shape=jax.ShapeDtypeStruct((M, N), x.dtype),
        grid=(M // tm, N // tn, K // tk),
        in_specs=[
            pl.BlockSpec((tm, tk), lambda i, j, kk: (i, kk)),
            pl.BlockSpec((tn, tk), lambda i, j, kk: (j, kk)),
            pl.BlockSpec((1, tn), lambda i, j, kk: (0, j)),
        ],
        out_specs=pl.BlockSpec((tm, tn), lambda i, j, kk: (i, j)),
        scratch_shapes=[pltpu.VMEM((tm, tn), jnp.float32)],
        compiler_params=pltpu.CompilerParams(
            dimension_semantics=("parallel", "parallel", "arbitrary")),
        cost_estimate=cost,
    )(x, w, b2)


# ----------------------------------------------------------------------------
# Kernel 2: blocked causal flash attention (online softmax).
# grid = (B, H, num_q_blocks, num_kv_blocks); kv axis last + "arbitrary".
# kv blocks strictly above the diagonal are skipped; iota mask only on the
# diagonal block; m/l/acc live in f32 VMEM scratch; finalize at kv == q block.
# ----------------------------------------------------------------------------
def flash_causal_kernel(q_ref, k_ref, v_ref, o_ref, m_sc, l_sc, acc_sc):
    qi = pl.program_id(2)
    ki = pl.program_id(3)
    t_q, hd = q_ref.shape
    t_kv = k_ref.shape[0]
    scale = 1.0 / math.sqrt(hd)

    @pl.when(ki == 0)
    def _init():
        m_sc[...] = jnp.full_like(m_sc, -jnp.inf)
        l_sc[...] = jnp.zeros_like(l_sc)
        acc_sc[...] = jnp.zeros_like(acc_sc)

    def _update(apply_mask):
        # Keep matmul operands in the input dtype (bf16-friendly); f32 accumulate.
        s = jax.lax.dot_general(
            q_ref[...], k_ref[...],
            dimension_numbers=(((1,), (1,)), ((), ())),
            preferred_element_type=jnp.float32) * scale          # (t_q, t_kv)
        if apply_mask:  # only the diagonal block needs the causal mask
            row = qi * t_q + jax.lax.broadcasted_iota(jnp.int32, (t_q, t_kv), 0)
            col = ki * t_kv + jax.lax.broadcasted_iota(jnp.int32, (t_q, t_kv), 1)
            s = jnp.where(col <= row, s, -jnp.inf)
        m_prev = m_sc[...]
        m_new = jnp.maximum(m_prev, jnp.max(s, axis=-1, keepdims=True))
        alpha = jnp.exp(m_prev - m_new)
        p = jnp.exp(s - m_new)
        l_sc[...] = alpha * l_sc[...] + jnp.sum(p, axis=-1, keepdims=True)
        acc_sc[...] = alpha * acc_sc[...] + jnp.dot(
            p.astype(v_ref.dtype), v_ref[...], preferred_element_type=jnp.float32)
        m_sc[...] = m_new

    @pl.when(ki < qi)          # fully-unmasked blocks below the diagonal
    def _interior():
        _update(apply_mask=False)

    @pl.when(ki == qi)         # diagonal block: mask, then finalize (last needed kv)
    def _diagonal():
        _update(apply_mask=True)
        inv_l = pl.reciprocal(l_sc[...], approx=True)
        o_ref[...] = (acc_sc[...] * inv_l).astype(o_ref.dtype)
    # ki > qi: strictly above the diagonal -> skipped entirely (half the MXU work).


def _attn_cost(B, H, T, hd, itemsize):
    return pl.CostEstimate(
        flops=2 * B * H * T * T * hd,            # causal ~half of 2*(QK^T + PV)
        transcendentals=B * H * T * T // 2,
        bytes_accessed=4 * B * T * (3 * H * hd) * itemsize)


def _attention_from_qkv(qkv, n_head, hd, t_blk):
    """Reads q/k/v slices straight from qkv (B,T,3C); writes y in (B,T,C)."""
    B, T, C3 = qkv.shape
    C = C3 // 3
    H = n_head
    nblk = T // t_blk
    q_spec = pl.BlockSpec((None, t_blk, hd), lambda b, h, qi, ki: (b, qi, h))
    k_spec = pl.BlockSpec((None, t_blk, hd), lambda b, h, qi, ki: (b, ki, H + h))
    v_spec = pl.BlockSpec((None, t_blk, hd), lambda b, h, qi, ki: (b, ki, 2 * H + h))
    o_spec = pl.BlockSpec((None, t_blk, hd), lambda b, h, qi, ki: (b, qi, h))
    return pl.pallas_call(
        flash_causal_kernel,
        out_shape=jax.ShapeDtypeStruct((B, T, C), qkv.dtype),
        grid=(B, H, nblk, nblk),
        in_specs=[q_spec, k_spec, v_spec],
        out_specs=o_spec,
        scratch_shapes=[pltpu.VMEM((t_blk, 1), jnp.float32),
                        pltpu.VMEM((t_blk, 1), jnp.float32),
                        pltpu.VMEM((t_blk, hd), jnp.float32)],
        compiler_params=pltpu.CompilerParams(
            dimension_semantics=("parallel", "parallel", "parallel", "arbitrary")),
        cost_estimate=_attn_cost(B, H, T, hd, jnp.dtype(qkv.dtype).itemsize),
    )(qkv, qkv, qkv)


def _attention_bhtd(q, k, v, t_blk):
    """Standard (B, H, T, hd) layout fallback (block spans the full head_dim)."""
    B, H, T, hd = q.shape
    nblk = T // t_blk
    q_spec = pl.BlockSpec((None, None, t_blk, hd), lambda b, h, qi, ki: (b, h, qi, 0))
    kv_spec = pl.BlockSpec((None, None, t_blk, hd), lambda b, h, qi, ki: (b, h, ki, 0))
    return pl.pallas_call(
        flash_causal_kernel,
        out_shape=jax.ShapeDtypeStruct((B, H, T, hd), q.dtype),
        grid=(B, H, nblk, nblk),
        in_specs=[q_spec, kv_spec, kv_spec],
        out_specs=q_spec,
        scratch_shapes=[pltpu.VMEM((t_blk, 1), jnp.float32),
                        pltpu.VMEM((t_blk, 1), jnp.float32),
                        pltpu.VMEM((t_blk, hd), jnp.float32)],
        compiler_params=pltpu.CompilerParams(
            dimension_semantics=("parallel", "parallel", "parallel", "arbitrary")),
        cost_estimate=_attn_cost(B, H, T, hd, jnp.dtype(q.dtype).itemsize),
    )(q, k, v)


# ----------------------------------------------------------------------------
# Module-equivalent forward
# ----------------------------------------------------------------------------
def causal_self_attention(x, w_attn, b_attn, w_proj, b_proj, n_head):
    """
    x:       (B, T, C)
    w_attn:  (3C, C)  (PyTorch nn.Linear layout: out_features x in_features)
    b_attn:  (3C,)
    w_proj:  (C, C)
    b_proj:  (C,)
    """
    B, T, C = x.shape
    hd = C // n_head

    # qkv = self.c_attn(x)      -- tiled, pipelined matmul; no w.T in the wrapper
    qkv = linear_pallas(x.reshape(B * T, C), w_attn, b_attn).reshape(B, T, 3 * C)

    t_blk = _largest_divisor(T, 128)

    if hd % 128 == 0:
        # Fast path: head indexing folded into BlockSpec index_maps (no HBM
        # transposes), lane-dense (>=128) output slabs written straight into
        # (B, T, C) layout for c_proj.
        y = _attention_from_qkv(qkv, n_head, hd, t_blk)                  # (B, T, C)
        y2d = y.reshape(B * T, C)
    else:
        # TODO(synk): for head_dim < 128 (e.g. GPT-2's 64) a lane-dense direct-qkv
        # path would need head pairing; fall back to the standard (B,H,T,hd) layout.
        q, k, v = jnp.split(qkv, 3, axis=2)
        q = q.reshape(B, T, n_head, hd).transpose(0, 2, 1, 3)
        k = k.reshape(B, T, n_head, hd).transpose(0, 2, 1, 3)
        v = v.reshape(B, T, n_head, hd).transpose(0, 2, 1, 3)
        y = _attention_bhtd(q, k, v, t_blk)                              # (B, H, T, hd)
        y2d = y.transpose(0, 2, 1, 3).reshape(B * T, C)

    # y = self.c_proj(y)
    out = linear_pallas(y2d, w_proj, b_proj)
    return out.reshape(B, T, C)


# ----------------------------------------------------------------------------
# Pure-JAX reference (correctness check)
# ----------------------------------------------------------------------------
def reference(x, w_attn, b_attn, w_proj, b_proj, n_head):
    B, T, C = x.shape
    hd = C // n_head
    qkv = x @ w_attn.T + b_attn
    q, k, v = jnp.split(qkv, 3, axis=2)
    q = q.reshape(B, T, n_head, hd).transpose(0, 2, 1, 3)
    k = k.reshape(B, T, n_head, hd).transpose(0, 2, 1, 3)
    v = v.reshape(B, T, n_head, hd).transpose(0, 2, 1, 3)
    s = jnp.einsum("bhqd,bhkd->bhqk", q, k) / math.sqrt(hd)
    mask = jnp.tril(jnp.ones((T, T), dtype=bool))
    s = jnp.where(mask, s, -jnp.inf)
    p = jax.nn.softmax(s, axis=-1)
    y = jnp.einsum("bhqk,bhkd->bhqd", p, v)
    y = y.transpose(0, 2, 1, 3).reshape(B, T, C)
    return y @ w_proj.T + b_proj


if __name__ == "__main__":
    key = jax.random.PRNGKey(0)
    kx, kwa, kba, kwp, kbp = jax.random.split(key, 5)

    # Small shapes consistent with the module (n_embd % n_head == 0).
    B, T, C = 2, 128, 256
    x = jax.random.normal(kx, (B, T, C), dtype=jnp.float32)
    w_attn = 0.02 * jax.random.normal(kwa, (3 * C, C), dtype=jnp.float32)
    b_attn = 0.02 * jax.random.normal(kba, (3 * C,), dtype=jnp.float32)
    w_proj = 0.02 * jax.random.normal(kwp, (C, C), dtype=jnp.float32)
    b_proj = 0.02 * jax.random.normal(kbp, (C,), dtype=jnp.float32)

    # Fast path: head_dim = 128 (direct-qkv BlockSpec indexing, lane-dense output).
    out = causal_self_attention(x, w_attn, b_attn, w_proj, b_proj, n_head=2)
    out = jax.block_until_ready(out)
    ref = reference(x, w_attn, b_attn, w_proj, b_proj, n_head=2)
    assert out.shape == (B, T, C)
    assert jnp.allclose(out, ref, atol=1e-2, rtol=1e-2), \
        f"fast-path mismatch: {jnp.max(jnp.abs(out - ref))}"

    # Fallback path: head_dim = 64 (GPT-2-style), standard (B,H,T,hd) layout.
    out2 = causal_self_attention(x, w_attn, b_attn, w_proj, b_proj, n_head=4)
    out2 = jax.block_until_ready(out2)
    ref2 = reference(x, w_attn, b_attn, w_proj, b_proj, n_head=4)
    assert jnp.allclose(out2, ref2, atol=1e-2, rtol=1e-2), \
        f"fallback-path mismatch: {jnp.max(jnp.abs(out2 - ref2))}"

    print("KERNEL_OK")
</pallas_src>

<mosaic_0001>
module attributes {stable_mosaic.version = 11 : i64} {
  func.func @linear_kernel(%arg0: i32, %arg1: i32, %arg2: i32, %arg3: memref<256x256xf32, #tpu.memory_space<vmem>>, %arg4: memref<256x256xf32, #tpu.memory_space<vmem>>, %arg5: memref<1x256xf32, #tpu.memory_space<vmem>>, %arg6: memref<256x256xf32, #tpu.memory_space<vmem>>, %arg7: memref<256x256xf32, #tpu.memory_space<vmem>>) attributes {dimension_semantics = [#tpu.dimension_semantics<parallel>, #tpu.dimension_semantics<parallel>, #tpu.dimension_semantics<arbitrary>], iteration_bounds = array<i64: 1, 3, 1>, scalar_prefetch = 0 : i64, scratch_operands = 1 : i64, tpu.core_type = #tpu.core_type<tc>, window_params = [{transform_indices = @transform_0, window_bounds = array<i64: 256, 256>}, {transform_indices = @transform_1, window_bounds = array<i64: 256, 256>}, {transform_indices = @transform_2, window_bounds = array<i64: 1, 256>}, {transform_indices = @transform_3, window_bounds = array<i64: 256, 256>}]} {
    %c0_i32 = arith.constant 0 : i32
    %0 = arith.cmpi eq, %arg2, %c0_i32 : i32
    %1 = arith.extui %0 : i1 to i32
    %c0_i32_0 = arith.constant 0 : i32
    %2 = arith.cmpi ne, %1, %c0_i32_0 : i32
    scf.if %2 {
      %cst_10 = arith.constant 0.000000e+00 : f32
      %12 = vector.broadcast %cst_10 : f32 to vector<256x256xf32>
      %c0_11 = arith.constant 0 : index
      %c0_12 = arith.constant 0 : index
      %13 = vector.load %arg7[%c0_11, %c0_12] : memref<256x256xf32, #tpu.memory_space<vmem>>, vector<256x256xf32>
      tpu.vector_store %arg7[%c0_11, %c0_12], %12 {strides = array<i32>} : memref<256x256xf32, #tpu.memory_space<vmem>>, vector<256x256xf32>,
    } else {
    }
    %c0 = arith.constant 0 : index
    %c0_1 = arith.constant 0 : index
    %3 = vector.load %arg7[%c0, %c0_1] : memref<256x256xf32, #tpu.memory_space<vmem>>, vector<256x256xf32>
    %c0_2 = arith.constant 0 : index
    %c0_3 = arith.constant 0 : index
    %4 = vector.load %arg3[%c0_2, %c0_3] : memref<256x256xf32, #tpu.memory_space<vmem>>, vector<256x256xf32>
    %c0_4 = arith.constant 0 : index
    %c0_5 = arith.constant 0 : index
    %5 = vector.load %arg4[%c0_4, %c0_5] : memref<256x256xf32, #tpu.memory_space<vmem>>, vector<256x256xf32>
    %cst = arith.constant dense<0.000000e+00> : vector<256x256xf32>
    %6 = tpu.matmul %4, %5, %cst {dimension_numbers = #tpu.dot_dimension_numbers<[1], [1], [0], [0], [0, 0, 1, 0], [], []>} : vector<256x256xf32>, vector<256x256xf32>, vector<256x256xf32> -> vector<256x256xf32>
    %7 = arith.addf %3, %6 : vector<256x256xf32>
    %c0_6 = arith.constant 0 : index
    %c0_7 = arith.constant 0 : index
    %8 = vector.load %arg7[%c0_6, %c0_7] : memref<256x256xf32, #tpu.memory_space<vmem>>, vector<256x256xf32>
    tpu.vector_store %arg7[%c0_6, %c0_7], %7 {strides = array<i32>} : memref<256x256xf32, #tpu.memory_space<vmem>>, vector<256x256xf32>,
    %c0_i32_8 = arith.constant 0 : i32
    %9 = arith.cmpi eq, %arg2, %c0_i32_8 : i32
    %10 = arith.extui %9 : i1 to i32
    %c0_i32_9 = arith.constant 0 : i32
    %11 = arith.cmpi ne, %10, %c0_i32_9 : i32
    scf.if %11 {
      %c0_10 = arith.constant 0 : index
      %c0_11 = arith.constant 0 : index
      %12 = vector.load %arg7[%c0_10, %c0_11] : memref<256x256xf32, #tpu.memory_space<vmem>>, vector<256x256xf32>
      %c0_12 = arith.constant 0 : index
      %c0_13 = arith.constant 0 : index
      %13 = vector.load %arg5[%c0_12, %c0_13] : memref<1x256xf32, #tpu.memory_space<vmem>>, vector<1x256xf32>
      %14 = vector.broadcast %13 : vector<1x256xf32> to vector<256x256xf32>
      %15 = arith.addf %12, %14 : vector<256x256xf32>
      %c0_14 = arith.constant 0 : index
      %c0_15 = arith.constant 0 : index
      %16 = vector.load %arg6[%c0_14, %c0_15] : memref<256x256xf32, #tpu.memory_space<vmem>>, vector<256x256xf32>
      tpu.vector_store %arg6[%c0_14, %c0_15], %15 {strides = array<i32>} : memref<256x256xf32, #tpu.memory_space<vmem>>, vector<256x256xf32>,
    } else {
    }
    return
  }
  func.func @transform_0(%arg0: i32, %arg1: i32, %arg2: i32) -> (i32, i32) {
    %c0_i32 = arith.constant 0 : i32
    return %arg0, %arg2 : i32, i32
  }
  func.func @transform_1(%arg0: i32, %arg1: i32, %arg2: i32) -> (i32, i32) {
    %c0_i32 = arith.constant 0 : i32
    return %arg1, %arg2 : i32, i32
  }
  func.func @transform_2(%arg0: i32, %arg1: i32, %arg2: i32) -> (i32, i32) {
    %c0_i32 = arith.constant 0 : i32
    %c0_i32_0 = arith.constant 0 : i32
    return %c0_i32, %arg1 : i32, i32
  }
  func.func @transform_3(%arg0: i32, %arg1: i32, %arg2: i32) -> (i32, i32) {
    %c0_i32 = arith.constant 0 : i32
    return %arg0, %arg1 : i32, i32
  }
}

</mosaic_0001>

<bundles_post_ra>
// kernel: tpu_custom_call.1
= control target key start
LH: loop header
LB: loop body
LE: loop exit
PB: predicated region body
PF: predicated region fallthrough
CT: control target
= control target key end

     0   :  { %8 = vsyncpa [#allocation4], 0  ;;  %s2055_s0 = inlined_call_operand.hbm [shape: f32[256,256], index: 0, kind: input, shape index: {}]   ;;  %s2056_s1 = inlined_call_operand.hbm [shape: f32[768,256], index: 1, kind: input, shape index: {}]   ;;  %s2057_s2 = inlined_call_operand.hbm [shape: f32[1,768], index: 2, kind: input, shape index: {}]   ;;  %s2058_s3 = inlined_call_operand.hbm [shape: f32[256,768], index: 3, kind: output, shape index: {}]  }
   0x1   :  { %9 = vsyncpa [#allocation7], 0 }
   0x2   :  { %11 = vsyncpa [#allocation7 + $0x1], 0 }
   0x3   :  { %12 = vsyncpa [#allocation5], 0 }
   0x4   :  { %14 = vsyncpa [#allocation5 + $0x1], 0  ;;  %s1651_s12 = smov 0   ;;  %s1653_s13 = smov 0  }
   0x5   :  { %s1655_s14 = smov 0   ;;  %s1657_s15 = smov 0  }
   0x6   :  { %s1659_s16 = smov 0   ;;  %s1661_s17 = smov 0  }
   0x7 LB: > { %s35_s18 = sadd.s32 1, %s1616_s16  ;;  %s76_s19 = sadd.s32 1, %s1608_s14  ;;  %s1620_s17 = sphi %s1661_s17, %s20_s17   ;;  %s1616_s16 = sphi %s1659_s16, %s2081_s16   ;;  %s1612_s15 = sphi %s1657_s15, %s2080_s15   ;;  %s1608_s14 = sphi %s1655_s14, %s2079_s14   ;;  %s1604_s13 = sphi %s1653_s13, %s2078_s13   ;;  %s1600_s12 = sphi %s1651_s12, %s2077_s12  }
   0x8   : > { %p37_p0 = scmp.ge.s32.totalorder %s35_s18, 3  ;;  %p83_p1 = scmp.ne.s32.totalorder %s1608_s14, %s1604_s13 }
   0x9   : > { %p84_p2 = scmp.eq.s32.totalorder %s1620_s17, 0  ;;  %p1397_p5 = scmp.lt.s32.totalorder %s1620_s17, 3 }
   0xa   : > { %s2083_s18 = smov (%p37_p0, %s35_s18), 0  ;;  %s186_s22 = sand.u32 1, %s1620_s17  }
   0xb   : > { %p1691_p3 = por %p84_p2, %p83_p1  ;;  %s71_s21 = ssub.s32 %s1616_s16, %s2083_s18 }
   0xc   : > { %p74_p4 = scmp.eq.s32.totalorder %s71_s21, 0  ;;  %s188_s23 = sand.u32 1, %s1608_s14  }
   0xd   : > { %s1286_s25 = sshll.u32 %s188_s23, 9  ;;  %s1304_s26 = sshll.u32 %s1616_s16, 13 }
   0xe   : > { %s1701_s24 = scalar_select %p74_p4, %s1608_s14, %s76_s19  }
   0xf   : > { %s199_s29 = scalar_lea.hbm %s2056_s1, %s1304_s26  ;;  %s190_s30 = scalar_lea.vmem [#allocation6], %s1286_s25 }
  0x10   : > { %s200_s4 = sshll.u32 %s190_s30, 4  ;;  %p1711_p6 = pnand %p1397_p5, %p1691_p3  ;;  %s201_s4 = int_to_ptr.vmem [resolvable:$true] %s200_s4 }
  0x11   : > { %s1715_s6 = scalar_lea.sflag [#allocation7], %s186_s22  ;;  %s1467_s7 = scalar_lea.vmem %s201_s4, 8192 }
  0x12   : > { %p2060_p7 = pneg %p1711_p6  ;;  %p1468_p8 = scmp.ne.s32.totalorder %s201_s4, %s1467_s7 }
  0x13   : > { %s1622_s8 = smov [#allocation6]  }
  0x14   : > { %p1470_p9 = pnand %p1468_p8, %p2060_p7  ;;  %s1472_s9 = sshll.u32 %s1622_s8, 4  ;;  %s1473_s9 = int_to_ptr.vmem [resolvable:$false] %s1472_s9 }
  0x15   : > { %s1474_s10 = scalar_lea.vmem %s1473_s9, 16384  ;;  %p1475_p11 = scmp.lt.s32.totalorder %s201_s4, %s1473_s9 }
  0x16   : > { %p1471_p10 = pneg %p1470_p9  ;;  %p1476_p12 = scmp.lt.s32.totalorder %s1474_s10, %s1467_s7 }
  0x18   : > { %p1477_p13 = por %p1476_p12, %p1475_p11 }
  0x1a   : > { %p1478_p0 = pnand %p1477_p13, %p1471_p10 }
  0x1c   : > { %1481 = shalt.err (!%p1478_p0)
}
  0x1d   : > { %s2059_s11 = smov 256   ;;  %s1624_s19 = smov 16  }
  0x1e   : > { %1388 = dma.hbm_to_vmem [thread:$0]  (!%p1711_p6), %s199_s29, 8192, %s201_s4, %s1715_s6, %s2059_s11, %s2059_s11, %s1624_s19  }
  0x1f   : > { %s1729_s20 = sadd.s32 4294967295, %s1620_s17   ;;  %s1282_s21 = sadd.s32 4294967294, %s1620_s17  }
  0x20   : > { %p89_p2 = scmp.ne.s32.totalorder %s1604_s13, %s1600_s12  ;;  %p2062_p3 = scmp.eq.s32.totalorder %s1729_s20, 0 }
  0x21   : > { %p141_p4 = scmp.eq.s32.totalorder %s1729_s20, 2  ;;  %p147_p5 = scmp.eq.s32.totalorder %s1282_s21, 2 }
  0x22   : > { %p1283_p8 = scmp.ge.s32.totalorder %s1620_s17, 1  ;;  %p1739_p9 = por %p2062_p3, %p89_p2 }
  0x23   : > { %p1746_p10 = por %p141_p4, %p83_p1  ;;  %p1750_p11 = por %p147_p5, %p89_p2 }
  0x24   : > { %s2066_s22 = scalar_select %p1739_p9, 1, 0 }
  0x25   : > { %s2067_s25 = scalar_select %p1746_p10, 1, 0 }
  0x26   : > { %s2068_s26 = scalar_select %p1750_p11, 1, 0 }
  0x27   : > { %p154_p12 = scmp.lt.s32.totalorder %s1620_s17, 4  ;;  %s1625_s28 = smov [#allocation3]  }
  0x28   : > { %s172_s29 = sshll.u32 %s1625_s28, 4  ;;  %s1290_s30 = sshll.u32 %s188_s23, 1  ;;  %s173_s29 = int_to_ptr.vmem [resolvable:$true] %s172_s29 }
  0x29   : > { %p1755_p13 = pnand %p1283_p8, %p154_p12  ;;  %s1305_s4 = sshll.u32 %s1616_s16, 5 }
  0x2a   : > { %s214_s7 = scalar_lea.vmem [#allocation8], %s1290_s30  ;;  %s220_s21 = scalar_lea.hbm %s2057_s2, %s1305_s4 }
  0x2b   : > { %p1381_p0 = pneg %p1755_p13  ;;  %s222_s8 = sshll.u32 %s214_s7, 4  ;;  %s223_s8 = int_to_ptr.vmem [resolvable:$true] %s222_s8 }
  0x2c   : > { %s1493_s11 = scalar_lea.vmem %s173_s29, 8192  ;;  %p1501_p12 = scmp.lt.s32.totalorder %s173_s29, %s173_s29 }
  0x2d   : > { %p1382_p1 = pnand %p1381_p0, %p2062_p3  ;;  %p1494_p4 = scmp.ne.s32.totalorder %s173_s29, %s1493_s11 }
  0x2e   : > { %p1502_p7 = scmp.lt.s32.totalorder %s1493_s11, %s1493_s11 }
  0x2f   : > { %p1484_p2 = pneg %p1382_p1 }
  0x30   : > { %p1503_p11 = por %p1502_p7, %p1501_p12 }
  0x31   : > { %p1496_p5 = pnand %p1494_p4, %p1484_p2 }
  0x33   : > { %p1497_p8 = pneg %p1496_p5 }
  0x35   : > { %p1504_p10 = pnand %p1503_p11, %p1497_p8 }
  0x37   : > { %1507 = shalt.err (!%p1504_p10)
}
  0x38   : > { %s2070_s23 = smov 256   ;;  %s1521_s4 = scalar_lea.vmem %s223_s8, 32 }
  0x39   : > { %1384 = dma.hbm_to_vmem [thread:$0]  (!%p1382_p1), %s2055_s0, 8192, %s173_s29, [#allocation4], %s2070_s23, %s2070_s23, %s1624_s19  }
  0x3a   : > { %p1522_p0 = scmp.ne.s32.totalorder %s223_s8, %s1521_s4  ;;  %p2071_p3 = pneg %p1711_p6 }
  0x3b   : > { %s1626_s7 = smov [#allocation8]  }
  0x3c   : > { %p1524_p9 = pnand %p1522_p0, %p2071_p3  ;;  %s1526_s9 = sshll.u32 %s1626_s7, 4  ;;  %s1527_s9 = int_to_ptr.vmem [resolvable:$false] %s1526_s9 }
  0x3d   : > { %s1528_s11 = scalar_lea.vmem %s1527_s9, 64  ;;  %p1529_p7 = scmp.lt.s32.totalorder %s223_s8, %s1527_s9 }
  0x3e   : > { %p1525_p2 = pneg %p1524_p9  ;;  %p1530_p10 = scmp.lt.s32.totalorder %s1528_s11, %s1521_s4 }
  0x40   : > { %p1531_p11 = por %p1530_p10, %p1529_p7 }
  0x42   : > { %p1532_p4 = pnand %p1531_p11, %p1525_p2 }
  0x44   : > { %1535 = shalt.err (!%p1532_p4)
}
  0x45   : > { %1391 = dma.hbm_to_vmem [thread:$0]  (!%p1711_p6), %s220_s21, 32, %s223_s8, %s1715_s6  }
  0x46   : > { %231 = sbr.rel (%p1755_p13) target bundleno = 482 (0x1e2), region = 32  ;;  %p2072_p1 = scmp.eq.s32.totalorder (!%p1755_p13), %s1729_s20, 0 }
  0x4b   : > { %1587 = dma.done.wait (%p2072_p1), [#allocation4], 8192   ;;  %p2073_p3 = pmov %p2072_p1 }
  0x4c   : > { %s237_s19 = sand.u32 1, %s1729_s20   ;;  %s1789_s29 = sand.u32 1, %s1604_s13  }
  0x4d   : > { %1589 = vsyncadd (%p2073_p3), [#allocation4], 4294959104  ;;  %s1295_s5 = sshll.u32 %s1789_s29, 9  ;;  %s238_s10 = scalar_lea.sflag [#allocation7], %s237_s19 }
  0x4e   : > { %s1794_s6 = scalar_lea.vmem [#allocation6], %s1295_s5  ;;  %p2074_p6 = scmp.ne.s32.totalorder %s2066_s22, 0 }
  0x50   : > { %1591 = dma.done.wait (%p2074_p6), %s238_s10, 8224  }
  0x51   : > { %1593 = vsyncadd (%p2074_p6), %s238_s10, 4294959072  ;;  %v512_v0 = vld [vmem:[%s1794_s6 + $0xf8] sm:$0xff]  ;;  %v511_v1 = vld [vmem:[%s1794_s6 + $0xf0] sm:$0xff]  ;;  %s1296_s20 = sshll.u32 %s1789_s29, 1  ;;  %s1873_s27 = scalar_lea.vmem [#allocation9], %s1295_s5 }
  0x52   : > { %v510_v2 = vld [vmem:[%s1794_s6 + $0xe8] sm:$0xff]  ;;  %545 = vmatprep.subr.mxu0 %v512_v0  ;;  %1307 = vmatprep.subr.mxu1 %v512_v0  ;;  %v509_v3 = vld [vmem:[%s1794_s6 + $0xe0] sm:$0xff]  ;;  %v508_v4 = vld [vmem:[%s1794_s6 + $0xd8] sm:$0xff]  ;;  %s250_s22 = scalar_lea.vmem [#allocation8], %s1296_s20  ;;  %s1306_s8 = sshll.u32 %s1612_s15, 8 }
  0x53   : > { %546 = vmatpush1.xpose.msra.mxu0 %v511_v1  ;;  %1339 = vmatpush1.xpose.msra.mxu1 %v511_v1  ;;  %v507_v5 = vld [vmem:[%s1794_s6 + $0xd0] sm:$0xff]  ;;  %v506_v6 = vld [vmem:[%s1794_s6 + $0xc8] sm:$0xff]  ;;  %v505_v7 = vld [vmem:[%s1794_s6 + $0xc0] sm:$0xff]  ;;  %s1154_s21 = sshll.u32 %s1873_s27, 4  ;;  %s2000_s28 = scalar_lea.hbm %s2058_s3, %s1306_s8  ;;  %s2002_s21 = int_to_ptr.vmem [resolvable:$true] %s1154_s21 }
  0x54   : > { %547 = vmatprep.subr.mxu0 %v510_v2  ;;  %1308 = vmatprep.subr.mxu1 %v510_v2  ;;  %v504_v8 = vld [vmem:[%s1794_s6 + $0xb8] sm:$0xff]  ;;  %v503_v9 = vld [vmem:[%s1794_s6 + $0xb0] sm:$0xff]  ;;  %v502_v10 = vld [vmem:[%s1794_s6 + $0xa8] sm:$0xff]  ;;  %s1138_s30 = scalar_lea.sflag [#allocation5], %s1789_s29  ;;  %s1536_s4 = scalar_lea.vmem %s2002_s21, 8192 }
  0x55   : > { %v501_v11 = vld [vmem:[%s1794_s6 + $0xa0] sm:$0xff]  ;;  %v500_v12 = vld [vmem:[%s1794_s6 + $0x98] sm:$0xff]  ;;  %v418_v13 = vld [vmem:[#allocation3 + $0x8] sm:$0xff]  ;;  %p1537_p9 = scmp.ne.s32.totalorder %s2002_s21, %s1536_s4  ;;  %p2075_p13 = scmp.ne.s32.totalorder %s2067_s25, 0 }
  0x56   : > { %v450_v14 = vld [vmem:[#allocation3 + $0x108] sm:$0xff]  ;;  %v499_v15 = vld [vmem:[%s1794_s6 + $0x90] sm:$0xff]  ;;  %609 = vmatprep.mubr.f32.mxu0 %v418_v13  ;;  %v497_v17 = vld [vmem:[%s1794_s6 + $0x80] sm:$0xff]  ;;  %s1627_s7 = smov [#allocation9]  }
  0x57   : > { %548 = vmatpush1.xpose.msra.mxu0 %v509_v3  ;;  %1340 = vmatpush1.xpose.msra.mxu1 %v509_v3  ;;  %v498_v16 = vld [vmem:[%s1794_s6 + $0x88] sm:$0xff]  ;;  %v496_v18 = vld [vmem:[%s1794_s6 + $0x78] sm:$0xff]  ;;  %v495_v19 = vld [vmem:[%s1794_s6 + $0x70] sm:$0xff]  ;;  %p1538_p5 = pnand %p1537_p9, %p2075_p13  ;;  %s1540_s9 = sshll.u32 %s1627_s7, 4  ;;  %s1541_s9 = int_to_ptr.vmem [resolvable:$false] %s1540_s9 }
  0x58   : > { %549 = vmatprep.subr.mxu0 %v508_v4  ;;  %1309 = vmatprep.subr.mxu1 %v508_v4  ;;  %v494_v20 = vld [vmem:[%s1794_s6 + $0x68] sm:$0xff]  ;;  %v493_v21 = vld [vmem:[%s1794_s6 + $0x60] sm:$0xff]  ;;  %v492_v22 = vld [vmem:[%s1794_s6 + $0x58] sm:$0xff]  ;;  %s1542_s11 = scalar_lea.vmem %s1541_s9, 16384  ;;  %p1543_p12 = scmp.lt.s32.totalorder %s2002_s21, %s1541_s9 }
  0x59   : > { %705 = vmatprep.mubr.f32.mxu1 %v450_v14  ;;  %v491_v23 = vld [vmem:[%s1794_s6 + $0x50] sm:$0xff]  ;;  %v490_v24 = vld [vmem:[%s1794_s6 + $0x48] sm:$0xff]  ;;  %v489_v25 = vld [vmem:[%s1794_s6 + $0x40] sm:$0xff]  ;;  %p1539_p8 = pneg %p1538_p5  ;;  %p1544_p0 = scmp.lt.s32.totalorder %s1542_s11, %s1536_s4 }
  0x5a   : > { %v488_v26 = vld [vmem:[%s1794_s6 + $0x38] sm:$0xff]  ;;  %v487_v27 = vld [vmem:[%s1794_s6 + $0x30] sm:$0xff]  ;;  %v486_v28 = vld [vmem:[%s1794_s6 + $0x28] sm:$0xff] }
  0x5b   : > { %550 = vmatpush1.xpose.msra.mxu0 %v507_v5  ;;  %1341 = vmatpush1.xpose.msra.mxu1 %v507_v5  ;;  %v485_v29 = vld [vmem:[%s1794_s6 + $0x20] sm:$0xff]  ;;  %v484_v30 = vld [vmem:[%s1794_s6 + $0x18] sm:$0xff]  ;;  %v483_v31 = vld [vmem:[%s1794_s6 + $0x10] sm:$0xff]  ;;  %p1545_p2 = por %p1544_p0, %p1543_p12 }
  0x5c   : > { %551 = vmatprep.subr.mxu0 %v506_v6  ;;  %1310 = vmatprep.subr.mxu1 %v506_v6  ;;  %v482_v32 = vld [vmem:[%s1794_s6 + $0x8] sm:$0xff]  ;;  %v481_v33 = vld [vmem:[%s1794_s6] sm:$0xff]  ;;  %v544_v34 = vld [vmem:[%s1794_s6 + $0x1f8] sm:$0xff] }
  0x5d   : > { %v543_v35 = vld [vmem:[%s1794_s6 + $0x1f0] sm:$0xff]  ;;  %v542_v36 = vld [vmem:[%s1794_s6 + $0x1e8] sm:$0xff]  ;;  %v541_v37 = vld [vmem:[%s1794_s6 + $0x1e0] sm:$0xff]  ;;  %p1546_p7 = pnand %p1545_p2, %p1539_p8 }
  0x5e   : > { %v540_v38 = vld [vmem:[%s1794_s6 + $0x1d8] sm:$0xff]  ;;  %v539_v39 = vld [vmem:[%s1794_s6 + $0x1d0] sm:$0xff]  ;;  %v538_v40 = vld [vmem:[%s1794_s6 + $0x1c8] sm:$0xff] }
  0x5f   : > { %552 = vmatpush1.xpose.msra.mxu0 %v505_v7  ;;  %1342 = vmatpush1.xpose.msra.mxu1 %v505_v7  ;;  %v537_v41 = vld [vmem:[%s1794_s6 + $0x1c0] sm:$0xff]  ;;  %v536_v42 = vld [vmem:[%s1794_s6 + $0x1b8] sm:$0xff]  ;;  %v535_v43 = vld [vmem:[%s1794_s6 + $0x1b0] sm:$0xff] }
  0x60   : > { %553 = vmatprep.subr.mxu0 %v504_v8  ;;  %1311 = vmatprep.subr.mxu1 %v504_v8  ;;  %v534_v44 = vld [vmem:[%s1794_s6 + $0x1a8] sm:$0xff]  ;;  %v533_v45 = vld [vmem:[%s1794_s6 + $0x1a0] sm:$0xff]  ;;  %v532_v46 = vld [vmem:[%s1794_s6 + $0x198] sm:$0xff] }
  0x61   : > { %v531_v47 = vld [vmem:[%s1794_s6 + $0x190] sm:$0xff]  ;;  %v530_v48 = vld [vmem:[%s1794_s6 + $0x188] sm:$0xff]  ;;  %v529_v49 = vld [vmem:[%s1794_s6 + $0x180] sm:$0xff] }
  0x62   : > { %v528_v50 = vld [vmem:[%s1794_s6 + $0x178] sm:$0xff]  ;;  %v527_v51 = vld [vmem:[%s1794_s6 + $0x170] sm:$0xff]  ;;  %v526_v52 = vld [vmem:[%s1794_s6 + $0x168] sm:$0xff] }
  0x63   : > { %554 = vmatpush1.xpose.msra.mxu0 %v503_v9  ;;  %1343 = vmatpush1.xpose.msra.mxu1 %v503_v9  ;;  %v525_v53 = vld [vmem:[%s1794_s6 + $0x160] sm:$0xff]  ;;  %v524_v54 = vld [vmem:[%s1794_s6 + $0x158] sm:$0xff]  ;;  %v523_v55 = vld [vmem:[%s1794_s6 + $0x150] sm:$0xff] }
  0x64   : > { %555 = vmatprep.subr.mxu0 %v502_v10  ;;  %1312 = vmatprep.subr.mxu1 %v502_v10  ;;  %v522_v56 = vld [vmem:[%s1794_s6 + $0x148] sm:$0xff]  ;;  %v521_v57 = vld [vmem:[%s1794_s6 + $0x140] sm:$0xff]  ;;  %v520_v58 = vld [vmem:[%s1794_s6 + $0x138] sm:$0xff] }
  0x65   : > { %v519_v59 = vld [vmem:[%s1794_s6 + $0x130] sm:$0xff]  ;;  %v518_v60 = vld [vmem:[%s1794_s6 + $0x128] sm:$0xff]  ;;  %v517_v61 = vld [vmem:[%s1794_s6 + $0x120] sm:$0xff] }
  0x66   : > { %v516_v62 = vld [vmem:[%s1794_s6 + $0x118] sm:$0xff]  ;;  %v515_v63 = vld [vmem:[%s1794_s6 + $0x110] sm:$0xff]  ;;  %v514_v0 = vld [vmem:[%s1794_s6 + $0x108] sm:$0xff] }
  0x67   : > { %556 = vmatpush1.xpose.msra.mxu0 %v501_v11  ;;  %1344 = vmatpush1.xpose.msra.mxu1 %v501_v11  ;;  %v513_v1 = vld [vmem:[%s1794_s6 + $0x100] sm:$0xff]  ;;  %v420_v4 = vld [vmem:[#allocation3 + $0x18] sm:$0xff]  ;;  %v419_v6 = vld [vmem:[#allocation3 + $0x10] sm:$0xff] }
  0x68   : > { %557 = vmatprep.subr.mxu0 %v500_v12  ;;  %1313 = vmatprep.subr.mxu1 %v500_v12  ;;  %v417_v2 = vld [vmem:[#allocation3] sm:$0xff]  ;;  %v452_v5 = vld [vmem:[#allocation3 + $0x118] sm:$0xff]  ;;  %v451_v7 = vld [vmem:[#allocation3 + $0x110] sm:$0xff] }
  0x69   : > { %v449_v3 = vld [vmem:[#allocation3 + $0x100] sm:$0xff]  ;;  %v422_v8 = vld [vmem:[#allocation3 + $0x28] sm:$0xff]  ;;  %v424_v12 = vld [vmem:[#allocation3 + $0x38] sm:$0xff] }
  0x6a   : > { %v454_v9 = vld [vmem:[#allocation3 + $0x128] sm:$0xff]  ;;  %v421_v10 = vld [vmem:[#allocation3 + $0x20] sm:$0xff]  ;;  %v456_v13 = vld [vmem:[#allocation3 + $0x138] sm:$0xff] }
  0x6b   : > { %558 = vmatpush1.xpose.msra.mxu0 %v499_v15  ;;  %1345 = vmatpush1.xpose.msra.mxu1 %v499_v15  ;;  %v453_v11 = vld [vmem:[#allocation3 + $0x120] sm:$0xff]  ;;  %v423_v14 = vld [vmem:[#allocation3 + $0x30] sm:$0xff] }
  0x6c   : > { %559 = vmatprep.subr.mxu0 %v498_v16  ;;  %1314 = vmatprep.subr.mxu1 %v498_v16  ;;  %v455_v15 = vld [vmem:[#allocation3 + $0x130] sm:$0xff]  ;;  %v426_v16 = vld [vmem:[#allocation3 + $0x48] sm:$0xff] }
  0x6f   : > { %560 = vmatpush1.xpose.msra.mxu0 %v497_v17  ;;  %1346 = vmatpush1.xpose.msra.mxu1 %v497_v17  ;;  %v458_v17 = vld [vmem:[#allocation3 + $0x148] sm:$0xff] }
  0x70   : > { %561 = vmatprep.subr.mxu0 %v496_v18  ;;  %1315 = vmatprep.subr.mxu1 %v496_v18  ;;  %v425_v18 = vld [vmem:[#allocation3 + $0x40] sm:$0xff] }
  0x73   : > { %562 = vmatpush1.xpose.msra.mxu0 %v495_v19  ;;  %1347 = vmatpush1.xpose.msra.mxu1 %v495_v19  ;;  %v457_v19 = vld [vmem:[#allocation3 + $0x140] sm:$0xff] }
  0x74   : > { %563 = vmatprep.subr.mxu0 %v494_v20  ;;  %1316 = vmatprep.subr.mxu1 %v494_v20  ;;  %v428_v20 = vld [vmem:[#allocation3 + $0x58] sm:$0xff] }
  0x77   : > { %564 = vmatpush1.xpose.msra.mxu0 %v493_v21  ;;  %1348 = vmatpush1.xpose.msra.mxu1 %v493_v21  ;;  %v460_v21 = vld [vmem:[#allocation3 + $0x158] sm:$0xff] }
  0x78   : > { %565 = vmatprep.subr.mxu0 %v492_v22  ;;  %1317 = vmatprep.subr.mxu1 %v492_v22  ;;  %v427_v22 = vld [vmem:[#allocation3 + $0x50] sm:$0xff] }
  0x7b   : > { %566 = vmatpush1.xpose.msra.mxu0 %v491_v23  ;;  %1349 = vmatpush1.xpose.msra.mxu1 %v491_v23  ;;  %v459_v23 = vld [vmem:[#allocation3 + $0x150] sm:$0xff] }
  0x7c   : > { %567 = vmatprep.subr.mxu0 %v490_v24  ;;  %1318 = vmatprep.subr.mxu1 %v490_v24  ;;  %v430_v24 = vld [vmem:[#allocation3 + $0x68] sm:$0xff] }
  0x7f   : > { %568 = vmatpush1.xpose.msra.mxu0 %v489_v25  ;;  %1350 = vmatpush1.xpose.msra.mxu1 %v489_v25  ;;  %v462_v25 = vld [vmem:[#allocation3 + $0x168] sm:$0xff] }
  0x80   : > { %569 = vmatprep.subr.mxu0 %v488_v26  ;;  %1319 = vmatprep.subr.mxu1 %v488_v26  ;;  %v429_v26 = vld [vmem:[#allocation3 + $0x60] sm:$0xff] }
  0x83   : > { %570 = vmatpush1.xpose.msra.mxu0 %v487_v27  ;;  %1351 = vmatpush1.xpose.msra.mxu1 %v487_v27  ;;  %v461_v27 = vld [vmem:[#allocation3 + $0x160] sm:$0xff] }
  0x84   : > { %571 = vmatprep.subr.mxu0 %v486_v28  ;;  %1320 = vmatprep.subr.mxu1 %v486_v28  ;;  %v432_v28 = vld [vmem:[#allocation3 + $0x78] sm:$0xff] }
  0x87   : > { %572 = vmatpush1.xpose.msra.mxu0 %v485_v29  ;;  %1352 = vmatpush1.xpose.msra.mxu1 %v485_v29  ;;  %v464_v29 = vld [vmem:[#allocation3 + $0x178] sm:$0xff] }
  0x88   : > { %573 = vmatprep.subr.mxu0 %v484_v30  ;;  %1321 = vmatprep.subr.mxu1 %v484_v30  ;;  %v431_v30 = vld [vmem:[#allocation3 + $0x70] sm:$0xff] }
  0x8b   : > { %574 = vmatpush1.xpose.msra.mxu0 %v483_v31  ;;  %1353 = vmatpush1.xpose.msra.mxu1 %v483_v31  ;;  %v463_v31 = vld [vmem:[#allocation3 + $0x170] sm:$0xff] }
  0x8c   : > { %575 = vmatprep.subr.mxu0 %v482_v32  ;;  %1322 = vmatprep.subr.mxu1 %v482_v32  ;;  %v434_v32 = vld [vmem:[#allocation3 + $0x88] sm:$0xff] }
  0x8f   : > { %576 = vmatpush1.xpose.msra.mxu0 %v481_v33  ;;  %1354 = vmatpush1.xpose.msra.mxu1 %v481_v33  ;;  %v466_v33 = vld [vmem:[#allocation3 + $0x188] sm:$0xff] }
  0x90   : > { %577 = vmatprep.subr.mxu0 %v544_v34  ;;  %1323 = vmatprep.subr.mxu1 %v544_v34  ;;  %v433_v34 = vld [vmem:[#allocation3 + $0x80] sm:$0xff] }
  0x93   : > { %578 = vmatpush2.xpose.msra.mxu0 %v543_v35  ;;  %1355 = vmatpush2.xpose.msra.mxu1 %v543_v35  ;;  %v465_v35 = vld [vmem:[#allocation3 + $0x180] sm:$0xff] }
  0x94   : > { %579 = vmatprep.subr.mxu0 %v542_v36  ;;  %1324 = vmatprep.subr.mxu1 %v542_v36  ;;  %v436_v36 = vld [vmem:[#allocation3 + $0x98] sm:$0xff] }
  0x97   : > { %580 = vmatpush2.xpose.msra.mxu0 %v541_v37  ;;  %1356 = vmatpush2.xpose.msra.mxu1 %v541_v37  ;;  %v468_v37 = vld [vmem:[#allocation3 + $0x198] sm:$0xff] }
  0x98   : > { %581 = vmatprep.subr.mxu0 %v540_v38  ;;  %1325 = vmatprep.subr.mxu1 %v540_v38  ;;  %v435_v38 = vld [vmem:[#allocation3 + $0x90] sm:$0xff] }
  0x9b   : > { %582 = vmatpush2.xpose.msra.mxu0 %v539_v39  ;;  %1357 = vmatpush2.xpose.msra.mxu1 %v539_v39  ;;  %v467_v39 = vld [vmem:[#allocation3 + $0x190] sm:$0xff] }
  0x9c   : > { %583 = vmatprep.subr.mxu0 %v538_v40  ;;  %1326 = vmatprep.subr.mxu1 %v538_v40  ;;  %v438_v40 = vld [vmem:[#allocation3 + $0xa8] sm:$0xff] }
  0x9f   : > { %584 = vmatpush2.xpose.msra.mxu0 %v537_v41  ;;  %1358 = vmatpush2.xpose.msra.mxu1 %v537_v41  ;;  %v470_v41 = vld [vmem:[#allocation3 + $0x1a8] sm:$0xff] }
  0xa0   : > { %585 = vmatprep.subr.mxu0 %v536_v42  ;;  %1327 = vmatprep.subr.mxu1 %v536_v42  ;;  %v437_v42 = vld [vmem:[#allocation3 + $0xa0] sm:$0xff] }
  0xa3   : > { %586 = vmatpush2.xpose.msra.mxu0 %v535_v43  ;;  %1359 = vmatpush2.xpose.msra.mxu1 %v535_v43  ;;  %v469_v43 = vld [vmem:[#allocation3 + $0x1a0] sm:$0xff] }
  0xa4   : > { %587 = vmatprep.subr.mxu0 %v534_v44  ;;  %1328 = vmatprep.subr.mxu1 %v534_v44  ;;  %v440_v44 = vld [vmem:[#allocation3 + $0xb8] sm:$0xff] }
  0xa7   : > { %588 = vmatpush2.xpose.msra.mxu0 %v533_v45  ;;  %1360 = vmatpush2.xpose.msra.mxu1 %v533_v45  ;;  %v472_v45 = vld [vmem:[#allocation3 + $0x1b8] sm:$0xff] }
  0xa8   : > { %589 = vmatprep.subr.mxu0 %v532_v46  ;;  %1329 = vmatprep.subr.mxu1 %v532_v46  ;;  %v439_v46 = vld [vmem:[#allocation3 + $0xb0] sm:$0xff] }
  0xab   : > { %590 = vmatpush2.xpose.msra.mxu0 %v531_v47  ;;  %1361 = vmatpush2.xpose.msra.mxu1 %v531_v47  ;;  %v471_v47 = vld [vmem:[#allocation3 + $0x1b0] sm:$0xff] }
  0xac   : > { %591 = vmatprep.subr.mxu0 %v530_v48  ;;  %1330 = vmatprep.subr.mxu1 %v530_v48  ;;  %v442_v48 = vld [vmem:[#allocation3 + $0xc8] sm:$0xff] }
  0xaf   : > { %592 = vmatpush2.xpose.msra.mxu0 %v529_v49  ;;  %1362 = vmatpush2.xpose.msra.mxu1 %v529_v49  ;;  %v474_v49 = vld [vmem:[#allocation3 + $0x1c8] sm:$0xff] }
  0xb0   : > { %593 = vmatprep.subr.mxu0 %v528_v50  ;;  %1331 = vmatprep.subr.mxu1 %v528_v50  ;;  %v441_v50 = vld [vmem:[#allocation3 + $0xc0] sm:$0xff] }
  0xb3   : > { %594 = vmatpush2.xpose.msra.mxu0 %v527_v51  ;;  %1363 = vmatpush2.xpose.msra.mxu1 %v527_v51  ;;  %v473_v51 = vld [vmem:[#allocation3 + $0x1c0] sm:$0xff] }
  0xb4   : > { %595 = vmatprep.subr.mxu0 %v526_v52  ;;  %1332 = vmatprep.subr.mxu1 %v526_v52  ;;  %v444_v52 = vld [vmem:[#allocation3 + $0xd8] sm:$0xff] }
  0xb7   : > { %596 = vmatpush2.xpose.msra.mxu0 %v525_v53  ;;  %1364 = vmatpush2.xpose.msra.mxu1 %v525_v53  ;;  %v476_v53 = vld [vmem:[#allocation3 + $0x1d8] sm:$0xff] }
  0xb8   : > { %597 = vmatprep.subr.mxu0 %v524_v54  ;;  %1333 = vmatprep.subr.mxu1 %v524_v54  ;;  %v443_v54 = vld [vmem:[#allocation3 + $0xd0] sm:$0xff] }
  0xbb   : > { %598 = vmatpush2.xpose.msra.mxu0 %v523_v55  ;;  %1365 = vmatpush2.xpose.msra.mxu1 %v523_v55  ;;  %v475_v55 = vld [vmem:[#allocation3 + $0x1d0] sm:$0xff] }
  0xbc   : > { %599 = vmatprep.subr.mxu0 %v522_v56  ;;  %1334 = vmatprep.subr.mxu1 %v522_v56  ;;  %v446_v56 = vld [vmem:[#allocation3 + $0xe8] sm:$0xff] }
  0xbf   : > { %600 = vmatpush2.xpose.msra.mxu0 %v521_v57  ;;  %1366 = vmatpush2.xpose.msra.mxu1 %v521_v57  ;;  %v478_v57 = vld [vmem:[#allocation3 + $0x1e8] sm:$0xff] }
  0xc0   : > { %601 = vmatprep.subr.mxu0 %v520_v58  ;;  %1335 = vmatprep.subr.mxu1 %v520_v58  ;;  %v445_v58 = vld [vmem:[#allocation3 + $0xe0] sm:$0xff] }
  0xc3   : > { %602 = vmatpush2.xpose.msra.mxu0 %v519_v59  ;;  %1367 = vmatpush2.xpose.msra.mxu1 %v519_v59  ;;  %v477_v59 = vld [vmem:[#allocation3 + $0x1e0] sm:$0xff] }
  0xc4   : > { %603 = vmatprep.subr.mxu0 %v518_v60  ;;  %1336 = vmatprep.subr.mxu1 %v518_v60  ;;  %v448_v60 = vld [vmem:[#allocation3 + $0xf8] sm:$0xff] }
  0xc7   : > { %604 = vmatpush2.xpose.msra.mxu0 %v517_v61  ;;  %1368 = vmatpush2.xpose.msra.mxu1 %v517_v61  ;;  %v480_v61 = vld [vmem:[#allocation3 + $0x1f8] sm:$0xff] }
  0xc8   : > { %605 = vmatprep.subr.mxu0 %v516_v62  ;;  %1337 = vmatprep.subr.mxu1 %v516_v62  ;;  %v447_v62 = vld [vmem:[#allocation3 + $0xf0] sm:$0xff] }
  0xcb   : > { %606 = vmatpush2.xpose.msra.mxu0 %v515_v63  ;;  %1369 = vmatpush2.xpose.msra.mxu1 %v515_v63  ;;  %v479_v63 = vld [vmem:[#allocation3 + $0x1f0] sm:$0xff] }
  0xcc   : > { %607 = vmatprep.subr.mxu0 %v514_v0  ;;  %1338 = vmatprep.subr.mxu1 %v514_v0  ;;  %v999_v0 = vlaneseq }
  0xcf   : > { %608 = vmatpush2.xpose.msra.mxu0 %v513_v1  ;;  %1370 = vmatpush2.xpose.msra.mxu1 %v513_v1  ;;  %v1000_v1 = vshrl.u32 %v999_v0, 7 }
  0xd2   : > { %610 = vmatmul.mubr.f32.vlgmr.msra.gmra.mxu0 %v417_v2  ;;  %706 = vmatmul.mubr.f32.vlgmr.msra.gmra.mxu1 %v449_v3  ;;  %v1001_v2 = vsub.s32 0, %v1000_v1  ;;  %v997_v3 = vld [vmem:[%s250_s22] sm:$0x3] }
  0xd3   : > { %615 = vmatprep.mubr.f32.mxu0 %v420_v4  ;;  %711 = vmatprep.mubr.f32.mxu1 %v452_v5  ;;  %v1005_v4 = vsub.s32 1, %v1000_v1 }
  0xd4   : > { %v1865_v5 = vrot.slane %v997_v3, %v1001_v2 }
  0xd6   : > { %616 = vmatmul.mubr.f32.gmra.mxu0 %v419_v6  ;;  %712 = vmatmul.mubr.f32.gmra.mxu1 %v451_v7  ;;  %v1867_v6 = vrot.slane %v997_v3, %v1005_v4 }
  0xd7   : > { %621 = vmatprep.mubr.f32.mxu0 %v422_v8  ;;  %717 = vmatprep.mubr.f32.mxu1 %v454_v9 }
  0xda   : > { %622 = vmatmul.mubr.f32.gmra.mxu0 %v421_v10  ;;  %718 = vmatmul.mubr.f32.gmra.mxu1 %v453_v11 }
  0xdb   : > { %627 = vmatprep.mubr.f32.mxu0 %v424_v12  ;;  %723 = vmatprep.mubr.f32.mxu1 %v456_v13 }
  0xde   : > { %628 = vmatmul.mubr.f32.gmra.mxu0 %v423_v14  ;;  %724 = vmatmul.mubr.f32.gmra.mxu1 %v455_v15 }
  0xdf   : > { %633 = vmatprep.mubr.f32.mxu0 %v426_v16  ;;  %729 = vmatprep.mubr.f32.mxu1 %v458_v17 }
  0xe2   : > { %634 = vmatmul.mubr.f32.gmra.mxu0 %v425_v18  ;;  %730 = vmatmul.mubr.f32.gmra.mxu1 %v457_v19 }
  0xe3   : > { %639 = vmatprep.mubr.f32.mxu0 %v428_v20  ;;  %735 = vmatprep.mubr.f32.mxu1 %v460_v21 }
  0xe6   : > { %640 = vmatmul.mubr.f32.gmra.mxu0 %v427_v22  ;;  %736 = vmatmul.mubr.f32.gmra.mxu1 %v459_v23 }
  0xe7   : > { %645 = vmatprep.mubr.f32.mxu0 %v430_v24  ;;  %741 = vmatprep.mubr.f32.mxu1 %v462_v25 }
  0xea   : > { %646 = vmatmul.mubr.f32.gmra.mxu0 %v429_v26  ;;  %742 = vmatmul.mubr.f32.gmra.mxu1 %v461_v27 }
  0xeb   : > { %651 = vmatprep.mubr.f32.mxu0 %v432_v28  ;;  %747 = vmatprep.mubr.f32.mxu1 %v464_v29 }
  0xee   : > { %652 = vmatmul.mubr.f32.gmra.mxu0 %v431_v30  ;;  %748 = vmatmul.mubr.f32.gmra.mxu1 %v463_v31 }
  0xef   : > { %657 = vmatprep.mubr.f32.mxu0 %v434_v32  ;;  %753 = vmatprep.mubr.f32.mxu1 %v466_v33 }
  0xf2   : > { %658 = vmatmul.mubr.f32.gmra.mxu0 %v433_v34  ;;  %754 = vmatmul.mubr.f32.gmra.mxu1 %v465_v35 }
  0xf3   : > { %663 = vmatprep.mubr.f32.mxu0 %v436_v36  ;;  %759 = vmatprep.mubr.f32.mxu1 %v468_v37 }
  0xf6   : > { %664 = vmatmul.mubr.f32.gmra.mxu0 %v435_v38  ;;  %760 = vmatmul.mubr.f32.gmra.mxu1 %v467_v39 }
  0xf7   : > { %669 = vmatprep.mubr.f32.mxu0 %v438_v40  ;;  %765 = vmatprep.mubr.f32.mxu1 %v470_v41 }
  0xfa   : > { %670 = vmatmul.mubr.f32.gmra.mxu0 %v437_v42  ;;  %766 = vmatmul.mubr.f32.gmra.mxu1 %v469_v43 }
  0xfb   : > { %675 = vmatprep.mubr.f32.mxu0 %v440_v44  ;;  %771 = vmatprep.mubr.f32.mxu1 %v472_v45 }
  0xfe   : > { %676 = vmatmul.mubr.f32.gmra.mxu0 %v439_v46  ;;  %772 = vmatmul.mubr.f32.gmra.mxu1 %v471_v47 }
  0xff   : > { %681 = vmatprep.mubr.f32.mxu0 %v442_v48  ;;  %777 = vmatprep.mubr.f32.mxu1 %v474_v49 }
 0x102   : > { %682 = vmatmul.mubr.f32.gmra.mxu0 %v441_v50  ;;  %778 = vmatmul.mubr.f32.gmra.mxu1 %v473_v51 }
 0x103   : > { %687 = vmatprep.mubr.f32.mxu0 %v444_v52  ;;  %783 = vmatprep.mubr.f32.mxu1 %v476_v53 }
 0x106   : > { %688 = vmatmul.mubr.f32.gmra.mxu0 %v443_v54  ;;  %784 = vmatmul.mubr.f32.gmra.mxu1 %v475_v55 }
 0x107   : > { %693 = vmatprep.mubr.f32.mxu0 %v446_v56  ;;  %789 = vmatprep.mubr.f32.mxu1 %v478_v57 }
 0x10a   : > { %694 = vmatmul.mubr.f32.gmra.mxu0 %v445_v58  ;;  %790 = vmatmul.mubr.f32.gmra.mxu1 %v477_v59 }
 0x10b   : > { %699 = vmatprep.mubr.f32.mxu0 %v448_v60  ;;  %795 = vmatprep.mubr.f32.mxu1 %v480_v61 }
 0x10e   : > { %700 = vmatmul.mubr.f32.gmra.mxu0 %v447_v62  ;;  %796 = vmatmul.mubr.f32.gmra.mxu1 %v479_v63 }
 0x192   : > { %v611_v7 = vpop.f32.mrf.mxu0  ;;  %v707_v8 = vpop.f32.mrf.mxu1 }
 0x193   : > { %v1009_v9 = vadd.f32 %v1865_v5, %v611_v7  ;;  %v1041_v10 = vadd.f32 %v1865_v5, %v707_v8 }
 0x194   : > { %v613_v11 = vpop.f32.mrf.mxu0  ;;  %v709_v12 = vpop.f32.mrf.mxu1 }
 0x195   : > { %1073 = vst [vmem:[%s1873_s27] sm:$0xff] %v1009_v9  ;;  %1105 = vst [vmem:[%s1873_s27 + $0x100] sm:$0xff] %v1041_v10  ;;  %v1010_v13 = vadd.f32 %v1867_v6, %v613_v11  ;;  %v1042_v14 = vadd.f32 %v1867_v6, %v709_v12 }
 0x196   : > { %v617_v15 = vpop.f32.mrf.mxu0  ;;  %v713_v16 = vpop.f32.mrf.mxu1 }
 0x197   : > { %1074 = vst [vmem:[%s1873_s27 + $0x8] sm:$0xff] %v1010_v13  ;;  %1106 = vst [vmem:[%s1873_s27 + $0x108] sm:$0xff] %v1042_v14  ;;  %v1011_v17 = vadd.f32 %v1865_v5, %v617_v15  ;;  %v1043_v18 = vadd.f32 %v1865_v5, %v713_v16 }
 0x198   : > { %v619_v19 = vpop.f32.mrf.mxu0  ;;  %v715_v20 = vpop.f32.mrf.mxu1 }
 0x199   : > { %1075 = vst [vmem:[%s1873_s27 + $0x10] sm:$0xff] %v1011_v17  ;;  %1107 = vst [vmem:[%s1873_s27 + $0x110] sm:$0xff] %v1043_v18  ;;  %v1012_v21 = vadd.f32 %v1867_v6, %v619_v19  ;;  %v1044_v22 = vadd.f32 %v1867_v6, %v715_v20 }
 0x19a   : > { %v623_v23 = vpop.f32.mrf.mxu0  ;;  %v719_v24 = vpop.f32.mrf.mxu1 }
 0x19b   : > { %1076 = vst [vmem:[%s1873_s27 + $0x18] sm:$0xff] %v1012_v21  ;;  %1108 = vst [vmem:[%s1873_s27 + $0x118] sm:$0xff] %v1044_v22  ;;  %v1013_v25 = vadd.f32 %v1865_v5, %v623_v23  ;;  %v1045_v26 = vadd.f32 %v1865_v5, %v719_v24 }
 0x19c   : > { %v625_v27 = vpop.f32.mrf.mxu0  ;;  %v721_v28 = vpop.f32.mrf.mxu1 }
 0x19d   : > { %1077 = vst [vmem:[%s1873_s27 + $0x20] sm:$0xff] %v1013_v25  ;;  %1109 = vst [vmem:[%s1873_s27 + $0x120] sm:$0xff] %v1045_v26  ;;  %v1014_v29 = vadd.f32 %v1867_v6, %v625_v27  ;;  %v1046_v30 = vadd.f32 %v1867_v6, %v721_v28 }
 0x19e   : > { %v629_v31 = vpop.f32.mrf.mxu0  ;;  %v725_v32 = vpop.f32.mrf.mxu1 }
 0x19f   : > { %1078 = vst [vmem:[%s1873_s27 + $0x28] sm:$0xff] %v1014_v29  ;;  %1110 = vst [vmem:[%s1873_s27 + $0x128] sm:$0xff] %v1046_v30  ;;  %v1015_v33 = vadd.f32 %v1865_v5, %v629_v31  ;;  %v1047_v34 = vadd.f32 %v1865_v5, %v725_v32 }
 0x1a0   : > { %v631_v35 = vpop.f32.mrf.mxu0  ;;  %v727_v36 = vpop.f32.mrf.mxu1 }
 0x1a1   : > { %1079 = vst [vmem:[%s1873_s27 + $0x30] sm:$0xff] %v1015_v33  ;;  %1111 = vst [vmem:[%s1873_s27 + $0x130] sm:$0xff] %v1047_v34  ;;  %v1016_v37 = vadd.f32 %v1867_v6, %v631_v35  ;;  %v1048_v38 = vadd.f32 %v1867_v6, %v727_v36 }
 0x1a2   : > { %v635_v39 = vpop.f32.mrf.mxu0  ;;  %v731_v40 = vpop.f32.mrf.mxu1 }
 0x1a3   : > { %1080 = vst [vmem:[%s1873_s27 + $0x38] sm:$0xff] %v1016_v37  ;;  %1112 = vst [vmem:[%s1873_s27 + $0x138] sm:$0xff] %v1048_v38  ;;  %v1017_v41 = vadd.f32 %v1865_v5, %v635_v39  ;;  %v1049_v42 = vadd.f32 %v1865_v5, %v731_v40 }
 0x1a4   : > { %v637_v43 = vpop.f32.mrf.mxu0  ;;  %v733_v44 = vpop.f32.mrf.mxu1 }
 0x1a5   : > { %1081 = vst [vmem:[%s1873_s27 + $0x40] sm:$0xff] %v1017_v41  ;;  %1113 = vst [vmem:[%s1873_s27 + $0x140] sm:$0xff] %v1049_v42  ;;  %v1018_v45 = vadd.f32 %v1867_v6, %v637_v43  ;;  %v1050_v46 = vadd.f32 %v1867_v6, %v733_v44 }
 0x1a6   : > { %v641_v47 = vpop.f32.mrf.mxu0  ;;  %v737_v48 = vpop.f32.mrf.mxu1 }
 0x1a7   : > { %1082 = vst [vmem:[%s1873_s27 + $0x48] sm:$0xff] %v1018_v45  ;;  %1114 = vst [vmem:[%s1873_s27 + $0x148] sm:$0xff] %v1050_v46  ;;  %v1019_v49 = vadd.f32 %v1865_v5, %v641_v47  ;;  %v1051_v50 = vadd.f32 %v1865_v5, %v737_v48 }
 0x1a8   : > { %v643_v51 = vpop.f32.mrf.mxu0  ;;  %v739_v52 = vpop.f32.mrf.mxu1 }
 0x1a9   : > { %1083 = vst [vmem:[%s1873_s27 + $0x50] sm:$0xff] %v1019_v49  ;;  %1115 = vst [vmem:[%s1873_s27 + $0x150] sm:$0xff] %v1051_v50  ;;  %v1020_v53 = vadd.f32 %v1867_v6, %v643_v51  ;;  %v1052_v54 = vadd.f32 %v1867_v6, %v739_v52 }
 0x1aa   : > { %v647_v55 = vpop.f32.mrf.mxu0  ;;  %v743_v56 = vpop.f32.mrf.mxu1 }
 0x1ab   : > { %1084 = vst [vmem:[%s1873_s27 + $0x58] sm:$0xff] %v1020_v53  ;;  %1116 = vst [vmem:[%s1873_s27 + $0x158] sm:$0xff] %v1052_v54  ;;  %v1021_v57 = vadd.f32 %v1865_v5, %v647_v55  ;;  %v1053_v58 = vadd.f32 %v1865_v5, %v743_v56 }
 0x1ac   : > { %v649_v59 = vpop.f32.mrf.mxu0  ;;  %v745_v60 = vpop.f32.mrf.mxu1 }
 0x1ad   : > { %1085 = vst [vmem:[%s1873_s27 + $0x60] sm:$0xff] %v1021_v57  ;;  %1117 = vst [vmem:[%s1873_s27 + $0x160] sm:$0xff] %v1053_v58  ;;  %v1022_v61 = vadd.f32 %v1867_v6, %v649_v59  ;;  %v1054_v62 = vadd.f32 %v1867_v6, %v745_v60 }
 0x1ae   : > { %v653_v63 = vpop.f32.mrf.mxu0  ;;  %v749_v0 = vpop.f32.mrf.mxu1 }
 0x1af   : > { %1086 = vst [vmem:[%s1873_s27 + $0x68] sm:$0xff] %v1022_v61  ;;  %1118 = vst [vmem:[%s1873_s27 + $0x168] sm:$0xff] %v1054_v62  ;;  %v1023_v1 = vadd.f32 %v1865_v5, %v653_v63  ;;  %v1055_v2 = vadd.f32 %v1865_v5, %v749_v0 }
 0x1b0   : > { %v655_v3 = vpop.f32.mrf.mxu0  ;;  %v751_v4 = vpop.f32.mrf.mxu1 }
 0x1b1   : > { %1087 = vst [vmem:[%s1873_s27 + $0x70] sm:$0xff] %v1023_v1  ;;  %1119 = vst [vmem:[%s1873_s27 + $0x170] sm:$0xff] %v1055_v2  ;;  %v1024_v7 = vadd.f32 %v1867_v6, %v655_v3  ;;  %v1056_v8 = vadd.f32 %v1867_v6, %v751_v4 }
 0x1b2   : > { %v659_v9 = vpop.f32.mrf.mxu0  ;;  %v755_v10 = vpop.f32.mrf.mxu1 }
 0x1b3   : > { %1088 = vst [vmem:[%s1873_s27 + $0x78] sm:$0xff] %v1024_v7  ;;  %1120 = vst [vmem:[%s1873_s27 + $0x178] sm:$0xff] %v1056_v8  ;;  %v1025_v11 = vadd.f32 %v1865_v5, %v659_v9  ;;  %v1057_v12 = vadd.f32 %v1865_v5, %v755_v10 }
 0x1b4   : > { %v661_v13 = vpop.f32.mrf.mxu0  ;;  %v757_v14 = vpop.f32.mrf.mxu1 }
 0x1b5   : > { %1089 = vst [vmem:[%s1873_s27 + $0x80] sm:$0xff] %v1025_v11  ;;  %1121 = vst [vmem:[%s1873_s27 + $0x180] sm:$0xff] %v1057_v12  ;;  %v1026_v15 = vadd.f32 %v1867_v6, %v661_v13  ;;  %v1058_v16 = vadd.f32 %v1867_v6, %v757_v14 }
 0x1b6   : > { %v665_v17 = vpop.f32.mrf.mxu0  ;;  %v761_v18 = vpop.f32.mrf.mxu1 }
 0x1b7   : > { %1090 = vst [vmem:[%s1873_s27 + $0x88] sm:$0xff] %v1026_v15  ;;  %1122 = vst [vmem:[%s1873_s27 + $0x188] sm:$0xff] %v1058_v16  ;;  %v1027_v19 = vadd.f32 %v1865_v5, %v665_v17  ;;  %v1059_v20 = vadd.f32 %v1865_v5, %v761_v18 }
 0x1b8   : > { %v667_v21 = vpop.f32.mrf.mxu0  ;;  %v763_v22 = vpop.f32.mrf.mxu1 }
 0x1b9   : > { %1091 = vst [vmem:[%s1873_s27 + $0x90] sm:$0xff] %v1027_v19  ;;  %1123 = vst [vmem:[%s1873_s27 + $0x190] sm:$0xff] %v1059_v20  ;;  %v1028_v23 = vadd.f32 %v1867_v6, %v667_v21  ;;  %v1060_v24 = vadd.f32 %v1867_v6, %v763_v22 }
 0x1ba   : > { %v671_v25 = vpop.f32.mrf.mxu0  ;;  %v767_v26 = vpop.f32.mrf.mxu1 }
 0x1bb   : > { %1092 = vst [vmem:[%s1873_s27 + $0x98] sm:$0xff] %v1028_v23  ;;  %1124 = vst [vmem:[%s1873_s27 + $0x198] sm:$0xff] %v1060_v24  ;;  %v1029_v27 = vadd.f32 %v1865_v5, %v671_v25  ;;  %v1061_v28 = vadd.f32 %v1865_v5, %v767_v26 }
 0x1bc   : > { %v673_v29 = vpop.f32.mrf.mxu0  ;;  %v769_v30 = vpop.f32.mrf.mxu1 }
 0x1bd   : > { %1093 = vst [vmem:[%s1873_s27 + $0xa0] sm:$0xff] %v1029_v27  ;;  %1125 = vst [vmem:[%s1873_s27 + $0x1a0] sm:$0xff] %v1061_v28  ;;  %v1030_v31 = vadd.f32 %v1867_v6, %v673_v29  ;;  %v1062_v32 = vadd.f32 %v1867_v6, %v769_v30 }
 0x1be   : > { %v677_v33 = vpop.f32.mrf.mxu0  ;;  %v773_v34 = vpop.f32.mrf.mxu1 }
 0x1bf   : > { %1094 = vst [vmem:[%s1873_s27 + $0xa8] sm:$0xff] %v1030_v31  ;;  %1126 = vst [vmem:[%s1873_s27 + $0x1a8] sm:$0xff] %v1062_v32  ;;  %v1031_v35 = vadd.f32 %v1865_v5, %v677_v33  ;;  %v1063_v36 = vadd.f32 %v1865_v5, %v773_v34 }
 0x1c0   : > { %v679_v37 = vpop.f32.mrf.mxu0  ;;  %v775_v38 = vpop.f32.mrf.mxu1 }
 0x1c1   : > { %1095 = vst [vmem:[%s1873_s27 + $0xb0] sm:$0xff] %v1031_v35  ;;  %1127 = vst [vmem:[%s1873_s27 + $0x1b0] sm:$0xff] %v1063_v36  ;;  %v1032_v39 = vadd.f32 %v1867_v6, %v679_v37  ;;  %v1064_v40 = vadd.f32 %v1867_v6, %v775_v38 }
 0x1c2   : > { %v683_v41 = vpop.f32.mrf.mxu0  ;;  %v779_v42 = vpop.f32.mrf.mxu1 }
 0x1c3   : > { %1096 = vst [vmem:[%s1873_s27 + $0xb8] sm:$0xff] %v1032_v39  ;;  %1128 = vst [vmem:[%s1873_s27 + $0x1b8] sm:$0xff] %v1064_v40  ;;  %v1033_v43 = vadd.f32 %v1865_v5, %v683_v41  ;;  %v1065_v44 = vadd.f32 %v1865_v5, %v779_v42 }
 0x1c4   : > { %v685_v45 = vpop.f32.mrf.mxu0  ;;  %v781_v46 = vpop.f32.mrf.mxu1 }
 0x1c5   : > { %1097 = vst [vmem:[%s1873_s27 + $0xc0] sm:$0xff] %v1033_v43  ;;  %1129 = vst [vmem:[%s1873_s27 + $0x1c0] sm:$0xff] %v1065_v44  ;;  %v1034_v47 = vadd.f32 %v1867_v6, %v685_v45  ;;  %v1066_v48 = vadd.f32 %v1867_v6, %v781_v46 }
 0x1c6   : > { %v689_v49 = vpop.f32.mrf.mxu0  ;;  %v785_v50 = vpop.f32.mrf.mxu1 }
 0x1c7   : > { %1098 = vst [vmem:[%s1873_s27 + $0xc8] sm:$0xff] %v1034_v47  ;;  %1130 = vst [vmem:[%s1873_s27 + $0x1c8] sm:$0xff] %v1066_v48  ;;  %v1035_v51 = vadd.f32 %v1865_v5, %v689_v49  ;;  %v1067_v52 = vadd.f32 %v1865_v5, %v785_v50 }
 0x1c8   : > { %v691_v53 = vpop.f32.mrf.mxu0  ;;  %v787_v54 = vpop.f32.mrf.mxu1 }
 0x1c9   : > { %1099 = vst [vmem:[%s1873_s27 + $0xd0] sm:$0xff] %v1035_v51  ;;  %1131 = vst [vmem:[%s1873_s27 + $0x1d0] sm:$0xff] %v1067_v52  ;;  %v1036_v55 = vadd.f32 %v1867_v6, %v691_v53  ;;  %v1068_v56 = vadd.f32 %v1867_v6, %v787_v54 }
 0x1ca   : > { %v695_v57 = vpop.f32.mrf.mxu0  ;;  %v791_v58 = vpop.f32.mrf.mxu1 }
 0x1cb   : > { %1100 = vst [vmem:[%s1873_s27 + $0xd8] sm:$0xff] %v1036_v55  ;;  %1132 = vst [vmem:[%s1873_s27 + $0x1d8] sm:$0xff] %v1068_v56  ;;  %v1037_v59 = vadd.f32 %v1865_v5, %v695_v57  ;;  %v1069_v60 = vadd.f32 %v1865_v5, %v791_v58 }
 0x1cc   : > { %v697_v61 = vpop.f32.mrf.mxu0  ;;  %v793_v62 = vpop.f32.mrf.mxu1 }
 0x1cd   : > { %1101 = vst [vmem:[%s1873_s27 + $0xe0] sm:$0xff] %v1037_v59  ;;  %1133 = vst [vmem:[%s1873_s27 + $0x1e0] sm:$0xff] %v1069_v60  ;;  %v1038_v63 = vadd.f32 %v1867_v6, %v697_v61  ;;  %v1070_v0 = vadd.f32 %v1867_v6, %v793_v62 }
 0x1ce   : > { %v701_v1 = vpop.f32.mrf.mxu0  ;;  %v797_v2 = vpop.f32.mrf.mxu1 }
 0x1cf   : > { %1102 = vst [vmem:[%s1873_s27 + $0xe8] sm:$0xff] %v1038_v63  ;;  %1134 = vst [vmem:[%s1873_s27 + $0x1e8] sm:$0xff] %v1070_v0  ;;  %v1039_v3 = vadd.f32 %v1865_v5, %v701_v1  ;;  %v1071_v4 = vadd.f32 %v1865_v5, %v797_v2 }
 0x1d0   : > { %v703_v7 = vpop.f32.mrf.mxu0  ;;  %v799_v8 = vpop.f32.mrf.mxu1 }
 0x1d1   : > { %1103 = vst [vmem:[%s1873_s27 + $0xf0] sm:$0xff] %v1039_v3  ;;  %1135 = vst [vmem:[%s1873_s27 + $0x1f0] sm:$0xff] %v1071_v4  ;;  %v1040_v9 = vadd.f32 %v1867_v6, %v703_v7  ;;  %v1072_v10 = vadd.f32 %v1867_v6, %v799_v8 }
 0x1d3   : > { %1104 = vst [vmem:[%s1873_s27 + $0xf8] sm:$0xff] %v1040_v9  ;;  %1136 = vst [vmem:[%s1873_s27 + $0x1f8] sm:$0xff] %v1072_v10 }
 0x1d4   : > { %1549 = shalt.err (!%p1546_p7)
}
 0x1d5   : > { %s1550_s19 = scalar_lea.hbm %s2000_s28, 8192  ;;  %s1554_s6 = scalar_lea.hbm %s2058_s3, 24576 }
 0x1d6   : > { %p1551_p10 = scmp.ne.s32.totalorder %s2000_s28, %s1550_s19  ;;  %p1555_p1 = scmp.lt.s32.totalorder %s2000_s28, %s2058_s3 }
 0x1d7   : > { %p1556_p3 = scmp.lt.s32.totalorder %s1554_s6, %s1550_s19 }
 0x1d8   : > { %p1552_p11 = pnand %p1551_p10, %p2075_p13 }
 0x1d9   : > { %p1557_p6 = por %p1556_p3, %p1555_p1 }
 0x1da   : > { %p1553_p4 = pneg %p1552_p11 }
 0x1dc   : > { %p1558_p9 = pnand %p1557_p6, %p1553_p4 }
 0x1de   : > { %1561 = shalt.err (!%p1558_p9)
}
 0x1df   : > { %s1628_s27 = smov 256   ;;  %s1629_s8 = smov 768  }
 0x1e0   : > { %s1630_s15 = smov 16  }
 0x1e1   : > { %1379 = dma.vmem_to_hbm [thread:$0]  (%p2075_p13), %s2002_s21, 8192, %s2000_s28, %s1138_s30, %s1628_s27, %s1629_s8, %s1630_s15  }
 0x1e2 PF: > { %p1399_p5 = scmp.ge.s32.totalorder %s1620_s17, 2  ;;  %s1169_s23 = sand.u32 1, %s1600_s12  }
 0x1e3   : > { %p2076_p8 = scmp.ne.s32.totalorder %s2068_s26, 0  ;;  %s1170_s4 = scalar_lea.sflag [#allocation5], %s1169_s23 }
 0x1e5   : > { %p1393_p12 = pnand %p1399_p5, %p2076_p8 }
 0x1e7   : > { %p1394_p0 = pneg %p1393_p12 }
 0x1e9   : > { %1595 = dma.done.wait (%p1394_p0), %s1170_s4, 8192  }
 0x1ea   : > { %1597 = vsyncadd (%p1394_p0), %s1170_s4, 4294959104  ;;  %s20_s17 = sadd.s32 1, %s1620_s17   ;;  %s2077_s12 = smov %s1604_s13 }
 0x1eb   : > { %p17_p2 = scmp.ge.s32.totalorder %s20_s17, 5   ;;  %s2078_s13 = smov %s1608_s14 }
 0x1ec   : > { %s2079_s14 = smov %s1701_s24  ;;  %s2080_s15 = smov %s1616_s16 }
 0x1ed   : > { %s2081_s16 = smov %s2083_s18  ;;  %19 = sbr.rel (!%p17_p2) target bundleno = 7 (0x7), region = 102 }
 0x1f2   :  { %1175 = vsyncpa [#allocation4], 1 }
 0x1f3   :  { %1177 = vsyncpa [#allocation4 + $0x1], 1 }
 0x1f4   :  { %1178 = vsyncpa [#allocation7], 1 }
 0x1f5   :  { %1180 = vsyncpa [#allocation7 + $0x1], 1 }
 0x1f6   :  { %1181 = vsyncpa [#allocation5], 1 }
 0x1f7   :  { %1183 = vsyncpa [#allocation5 + $0x1], 1 }

</bundles_post_ra>
